<compile_context>
chip_gen: v6e
topology: v6e:2x2x1
jax: 0.10.0
libtpu: 0.0.40
codegen_flags: <defaults>
</compile_context>

<pallas_src>
import functools
import math

import jax
import jax.numpy as jnp
from jax.experimental import pallas as pl
from jax.experimental.pallas import tpu as pltpu


# ----------------------------------------------------------------------------
# Pass 1: per-channel batch statistics of the conv output (training-mode BN).
# Output = per-batch-block partial (sum, sum-of-squares): resident accumulator
# across the "arbitrary" lane axis, distinct block per "parallel" batch block.
# ----------------------------------------------------------------------------
def _stats_kernel(p_ref, w_ref, ssum_ref, ssq_ref, *, NB):
    @pl.when(pl.program_id(1) == 0)
    def _():
        ssum_ref[...] = jnp.zeros_like(ssum_ref)
        ssq_ref[...] = jnp.zeros_like(ssq_ref)

    w = w_ref[...]                                            # (G*KK, C*KK) bf16
    acc_s = jnp.zeros(ssum_ref.shape, jnp.float32)
    acc_q = jnp.zeros(ssq_ref.shape, jnp.float32)
    for b in range(NB):                                       # NB is static & small
        # Conv2d(C, G*k*k, k, bias=False) on unfolded patches == one matmul per tile.
        s = jnp.dot(w, p_ref[b], preferred_element_type=jnp.float32)   # (G*KK, T)
        acc_s = acc_s + jnp.sum(s, axis=1, keepdims=True)
        acc_q = acc_q + jnp.sum(s * s, axis=1, keepdims=True)
    ssum_ref[...] += acc_s
    ssq_ref[...] += acc_q


# ----------------------------------------------------------------------------
# Pass 2: conv (BN scale folded into the weights) + BN shift + softmax + grouped
# spatially-adaptive weighted sum.  Whole-slab vector ops, lane-dense stores.
# ----------------------------------------------------------------------------
def _apply_kernel(p_ref, w_ref, shift_ref, out_ref, sig_ref, *, C, G, KK, NB):
    w = w_ref[...]                                            # (G*KK, C*KK) bf16
    shift = shift_ref[...]                                    # (G*KK, 1)   f32
    Cg = C // G
    for b in range(NB):                                       # static batch block
        p = p_ref[b]                                          # (C*KK, T) bf16
        s = jnp.dot(w, p, preferred_element_type=jnp.float32) + shift   # (G*KK, T)

        # Softmax over the G*KK channel axis; divide via EUP reciprocal.
        m = jnp.max(s, axis=0, keepdims=True)
        e = jnp.exp(s - m)
        sm = e * pl.reciprocal(jnp.sum(e, axis=0, keepdims=True), approx=True)
        sig_ref[b] = sm.astype(sig_ref.dtype)                 # one lane-dense store

        if KK == 1:
            # out[c, :] = p[c, :] * sm[c // Cg, :].  Per-group static ref slices:
            # no second (C, T) slab materialized, stores stay full lane-width.
            for g in range(G):
                out_ref[b, g * Cg:(g + 1) * Cg, :] = (
                    p[g * Cg:(g + 1) * Cg, :].astype(jnp.float32) * sm[g:g + 1, :]
                ).astype(out_ref.dtype)
        else:
            # General k*k path (unreachable for the as-written module; header note).
            T = p.shape[1]
            smf = jnp.broadcast_to(
                sm.reshape(G, 1, KK, T), (G, Cg, KK, T)).reshape(C * KK, T)
            out_ref[b, :, :] = jnp.sum(
                (p.astype(jnp.float32) * smf).reshape(C, KK, T), axis=1
            ).astype(out_ref.dtype)


# ----------------------------------------------------------------------------
# JAX glue
# ----------------------------------------------------------------------------
def _unfold_nchw(x, k):
    """F.unfold(x, kernel_size=k) -> (N, C*k*k, (H-k+1)*(W-k+1)), channel-major."""
    N, C, H, W = x.shape
    Hs, Ws = H - k + 1, W - k + 1
    cols = []
    for i in range(k):
        for j in range(k):
            cols.append(x[:, :, i:i + Hs, j:j + Ws].reshape(N, C, 1, Hs * Ws))
    p = jnp.concatenate(cols, axis=2)                 # (N, C, k*k, Hs*Ws)
    return p.reshape(N, C * k * k, Hs * Ws)


def _vmem_config():
    """(vmem_limit_bytes, tile_budget_bytes), per TPU generation.

    v5e/v6e have 128 MiB physical VMEM -> 96 MiB limit, ~40 MiB tile budget.
    v7x has 64 MiB -> stay <= 48 MiB limit, ~20 MiB budget.  Unknown -> conservative.
    """
    cap = 64 << 20
    try:
        cap = int(getattr(pltpu.get_tpu_info(), "vmem_capacity_bytes", cap))
    except Exception:
        pass
    if cap >= (100 << 20):
        return 96 << 20, 40 << 20
    return 48 << 20, 20 << 20


def _choose_tiling(N, Ls, bytes_per_lane, budget_bytes):
    """Pick (NB, TILE_L).

    TILE_L: largest multiple-of-128 divisor of Ls (Ls is already 128-padded) whose
    double-buffered block fits the budget.  NB: batch rows per block — only raised
    when the full lane extent alone still gives tiny per-step DMAs, to amortize the
    ~0.35 us per-grid-step pipeline overhead.
    """
    tile_l = 128
    for t in range(128, Ls + 1, 128):
        if Ls % t == 0 and 2 * t * bytes_per_lane <= budget_bytes:
            tile_l = t
    nb = 1
    if tile_l == Ls:
        for cand in range(2, N + 1):
            if (N % cand == 0
                    and 2 * cand * tile_l * bytes_per_lane <= budget_bytes
                    and cand * tile_l * bytes_per_lane <= (8 << 20)):
                nb = cand
    return nb, tile_l


def adap_forward(y, conv_w, gamma, beta, kernel_size, group, eps=1e-5):
    N, C, H, W = y.shape
    k, G = kernel_size, group
    KK = k * k
    assert C % G == 0
    Hs, Ws = H - k + 1, W - k + 1
    Ls = Hs * Ws
    # Mirror the PyTorch reshape constraint (unfold output reshaped with h*w of y):
    assert Ls == H * W, "as-written ADAP.forward only runs with kernel_size=1"

    stream_dtype = jnp.bfloat16            # big HBM streams in bf16
    bpe = jnp.dtype(stream_dtype).itemsize

    # (N, C*KK, Ls) patch layout — for k == 1 this is a pure reshape (no HBM shuffle).
    if k == 1:
        patches = y.reshape(N, C, Ls).astype(stream_dtype)
    else:
        patches = _unfold_nchw(y, k).astype(stream_dtype)

    # Pad the lane axis to a multiple of 128: every store stays an unmasked vst.
    # Zero-padded columns contribute 0 to the BN sums; the divisor stays N*Ls.
    Lp = ((Ls + 127) // 128) * 128
    if Lp != Ls:
        patches = jnp.pad(patches, ((0, 0), (0, 0), (0, Lp - Ls)))

    w2 = conv_w.reshape(G * KK, C * KK).astype(jnp.float32)
    gamma2 = gamma.reshape(G * KK, 1).astype(jnp.float32)
    beta2 = beta.reshape(G * KK, 1).astype(jnp.float32)
    w2_bf = w2.astype(stream_dtype)

    vmem_limit, budget = _vmem_config()

    w_spec = pl.BlockSpec((G * KK, C * KK), lambda n, l: (0, 0))
    vec_spec = pl.BlockSpec((G * KK, 1), lambda n, l: (0, 0))

    # ---- pass 1: BN batch statistics of conv(y) (per-batch-block partial sums) ----
    NB1, T1 = _choose_tiling(N, Lp, bpe * C * KK, budget)
    nblk1 = N // NB1
    ssum_b, ssq_b = pl.pallas_call(
        functools.partial(_stats_kernel, NB=NB1),
        grid=(nblk1, Lp // T1),
        in_specs=[pl.BlockSpec((NB1, C * KK, T1), lambda n, l: (n, 0, l)),
                  w_spec],
        out_specs=(pl.BlockSpec((None, G * KK, 1), lambda n, l: (n, 0, 0)),
                   pl.BlockSpec((None, G * KK, 1), lambda n, l: (n, 0, 0))),
        out_shape=(jax.ShapeDtypeStruct((nblk1, G * KK, 1), jnp.float32),
                   jax.ShapeDtypeStruct((nblk1, G * KK, 1), jnp.float32)),
        compiler_params=pltpu.CompilerParams(
            dimension_semantics=("parallel", "arbitrary"),
            vmem_limit_bytes=vmem_limit),
        cost_estimate=pl.CostEstimate(
            flops=2 * (G * KK) * (C * KK) * N * Lp + 4 * (G * KK) * N * Lp,
            transcendentals=0,
            bytes_accessed=bpe * (C * KK) * N * Lp),
    )(patches, w2_bf)

    # Fold BN (training-mode batch stats, biased variance) into scale/shift (f32).
    ssum = jnp.sum(ssum_b, axis=0)                    # (G*KK, 1)
    ssq = jnp.sum(ssq_b, axis=0)
    cnt = float(N * Ls)                               # true count; padding adds zero
    mean = ssum / cnt
    var = jnp.maximum(ssq / cnt - mean * mean, 0.0)
    scale = gamma2 * jax.lax.rsqrt(var + eps)         # (G*KK, 1)
    w_scaled = (w2 * scale).astype(stream_dtype)      # BN scale folded into conv weight
    shift = beta2 - mean * scale                      # (G*KK, 1) f32

    # ---- pass 2: conv + BN shift + softmax + grouped adaptive weighted sum ----
    NB2, T2 = _choose_tiling(N, Lp, bpe * (C * KK + C + G * KK), budget)
    nblk2 = N // NB2
    kernel = functools.partial(_apply_kernel, C=C, G=G, KK=KK, NB=NB2)
    out3, sig3 = pl.pallas_call(
        kernel,
        grid=(nblk2, Lp // T2),
        in_specs=[pl.BlockSpec((NB2, C * KK, T2), lambda n, l: (n, 0, l)),
                  w_spec, vec_spec],
        out_specs=(pl.BlockSpec((NB2, C, T2), lambda n, l: (n, 0, l)),
                   pl.BlockSpec((NB2, G * KK, T2), lambda n, l: (n, 0, l))),
        out_shape=(jax.ShapeDtypeStruct((N, C, Lp), stream_dtype),
                   jax.ShapeDtypeStruct((N, G * KK, Lp), stream_dtype)),
        compiler_params=pltpu.CompilerParams(
            dimension_semantics=("parallel", "parallel"),
            vmem_limit_bytes=vmem_limit),
        cost_estimate=pl.CostEstimate(
            flops=(2 * (G * KK) * (C * KK) + 6 * (G * KK) + 3 * C * KK) * N * Lp,
            transcendentals=(G * KK + 1) * N * Lp,
            bytes_accessed=bpe * (C * KK + C + G * KK) * N * Lp),
    )(patches, w_scaled, shift)

    out = out3[:, :, :Ls].reshape(N, C, H, W)                 # slice + pure reshape
    sigma = sig3[:, :, :Ls].reshape(N, G, KK, Ls)[:, :, None, :, :]   # (N,G,1,KK,Ls)
    return out, sigma


def adap_reference(y, conv_w, gamma, beta, kernel_size, group):
    """Pure-JAX mirror of the PyTorch forward (training-mode BN), for sanity checking."""
    N, C, H, W = y.shape
    k, G = kernel_size, group
    KK = k * k
    unf = _unfold_nchw(y, k)                                      # (N, C*KK, Ls)
    sigma = jnp.einsum('ok,nkl->nol', conv_w.reshape(G * KK, C * KK), unf)
    mean = sigma.mean(axis=(0, 2), keepdims=True)
    var = jnp.square(sigma - mean).mean(axis=(0, 2), keepdims=True)
    sigma = (sigma - mean) / jnp.sqrt(var + 1e-5)
    sigma = sigma * gamma.reshape(1, -1, 1) + beta.reshape(1, -1, 1)
    sigma = jax.nn.softmax(sigma, axis=1)                         # (N, G*KK, Ls)
    n, c, q = sigma.shape
    sigma = sigma.reshape(n, 1, c, q)
    yy = unf.reshape(N, C, KK, H * W)
    y5 = yy.transpose(1, 0, 2, 3).reshape(G, C // G, N, KK, H * W).transpose(2, 0, 1, 3, 4)
    n, c2, p_, q = sigma.shape
    sigma5 = sigma.transpose(2, 0, 1, 3).reshape(p_ // KK, KK, n, c2, q).transpose(2, 0, 3, 1, 4)
    out = jnp.sum(y5 * sigma5, axis=3).reshape(N, C, H, W)
    return out, sigma5


def init_params(key, in_channels, kernel_size, group):
    out_ch = group * kernel_size * kernel_size
    # kaiming_normal_(mode='fan_out', nonlinearity='relu'): std = sqrt(2 / (out_ch * k*k))
    fan_out = out_ch * kernel_size * kernel_size
    std = math.sqrt(2.0 / fan_out)
    w = std * jax.random.normal(
        key, (out_ch, in_channels, kernel_size, kernel_size), jnp.float32)
    gamma = jnp.ones((out_ch,), jnp.float32)   # BatchNorm2d default affine weight
    beta = jnp.zeros((out_ch,), jnp.float32)   # BatchNorm2d default affine bias
    return w, gamma, beta


if __name__ == "__main__":
    key = jax.random.PRNGKey(0)
    k_in, k_w = jax.random.split(key)

    N, C, H, W = 2, 4, 16, 16
    kernel_size, group = 1, 2   # kernel_size=1: the only config the reference forward runs

    y = jax.random.normal(k_in, (N, C, H, W), jnp.float32)
    conv_w, gamma, beta = init_params(k_w, C, kernel_size, group)

    out, sigma = adap_forward(y, conv_w, gamma, beta, kernel_size, group)
    jax.block_until_ready((out, sigma))

    # Sanity check against the pure-JAX mirror of the PyTorch forward.
    out_ref, sigma_ref = adap_reference(y, conv_w, gamma, beta, kernel_size, group)
    assert out.shape == (N, C, H, W)
    assert sigma.shape == (N, group, 1, kernel_size * kernel_size, H * W)
    assert bool(jnp.allclose(out.astype(jnp.float32), out_ref, atol=5e-2, rtol=5e-2))
    assert bool(jnp.allclose(sigma.astype(jnp.float32), sigma_ref, atol=5e-2, rtol=5e-2))

    print("KERNEL_OK")
</pallas_src>

<mosaic_0001>
module attributes {stable_mosaic.version = 11 : i64} {
  func.func @_stats_kernel(%arg0: i32, %arg1: i32, %arg2: memref<2x4x256xbf16, #tpu.memory_space<vmem>>, %arg3: memref<2x4xbf16, #tpu.memory_space<vmem>>, %arg4: memref<1x2x1xf32, #tpu.memory_space<vmem>>, %arg5: memref<1x2x1xf32, #tpu.memory_space<vmem>>) attributes {dimension_semantics = [#tpu.dimension_semantics<parallel>, #tpu.dimension_semantics<arbitrary>], iteration_bounds = array<i64: 1, 1>, scalar_prefetch = 0 : i64, scratch_operands = 0 : i64, tpu.core_type = #tpu.core_type<tc>, window_params = [{transform_indices = @transform_0, window_bounds = array<i64: 2, 4, 256>}, {pipeline_mode = #tpu.pipeline_mode<synchronous>, transform_indices = @transform_1, window_bounds = array<i64: 2, 4>}, {transform_indices = @transform_2, window_bounds = array<i64: 1, 2, 1>}, {transform_indices = @transform_3, window_bounds = array<i64: 1, 2, 1>}]} {
    %c0_i32 = arith.constant 0 : i32
    %0 = arith.cmpi eq, %arg1, %c0_i32 : i32
    %1 = arith.extui %0 : i1 to i32
    %c0_i32_0 = arith.constant 0 : i32
    %2 = arith.cmpi ne, %1, %c0_i32_0 : i32
    scf.if %2 {
      %cst_26 = arith.constant 0.000000e+00 : f32
      %38 = vector.broadcast %cst_26 : f32 to vector<2x1xf32>
      %c0_27 = arith.constant 0 : index
      %c0_28 = arith.constant 0 : index
      %c0_29 = arith.constant 0 : index
      %39 = vector.load %arg4[%c0_27, %c0_28, %c0_29] : memref<1x2x1xf32, #tpu.memory_space<vmem>>, vector<1x2x1xf32>
      %40 = vector.shape_cast %39 : vector<1x2x1xf32> to vector<2x1xf32>
      %41 = vector.shape_cast %38 : vector<2x1xf32> to vector<1x2x1xf32>
      tpu.vector_store %arg4[%c0_27, %c0_28, %c0_29], %41 {strides = array<i32>} : memref<1x2x1xf32, #tpu.memory_space<vmem>>, vector<1x2x1xf32>,
      %cst_30 = arith.constant 0.000000e+00 : f32
      %42 = vector.broadcast %cst_30 : f32 to vector<2x1xf32>
      %c0_31 = arith.constant 0 : index
      %c0_32 = arith.constant 0 : index
      %c0_33 = arith.constant 0 : index
      %43 = vector.load %arg5[%c0_31, %c0_32, %c0_33] : memref<1x2x1xf32, #tpu.memory_space<vmem>>, vector<1x2x1xf32>
      %44 = vector.shape_cast %43 : vector<1x2x1xf32> to vector<2x1xf32>
      %45 = vector.shape_cast %42 : vector<2x1xf32> to vector<1x2x1xf32>
      tpu.vector_store %arg5[%c0_31, %c0_32, %c0_33], %45 {strides = array<i32>} : memref<1x2x1xf32, #tpu.memory_space<vmem>>, vector<1x2x1xf32>,
    } else {
    }
    %c0 = arith.constant 0 : index
    %c0_1 = arith.constant 0 : index
    %3 = vector.load %arg3[%c0, %c0_1] : memref<2x4xbf16, #tpu.memory_space<vmem>>, vector<2x4xbf16>
    %cst = arith.constant 0.000000e+00 : f32
    %4 = vector.broadcast %cst : f32 to vector<2x1xf32>
    %cst_2 = arith.constant 0.000000e+00 : f32
    %5 = vector.broadcast %cst_2 : f32 to vector<2x1xf32>
    %c0_3 = arith.constant 0 : index
    %c0_4 = arith.constant 0 : index
    %c0_5 = arith.constant 0 : index
    %6 = vector.load %arg2[%c0_3, %c0_4, %c0_5] : memref<2x4x256xbf16, #tpu.memory_space<vmem>>, vector<1x4x256xbf16>
    %7 = vector.shape_cast %6 : vector<1x4x256xbf16> to vector<4x256xbf16>
    %cst_6 = arith.constant dense<0.000000e+00> : vector<2x256xf32>
    %8 = tpu.matmul %3, %7, %cst_6 {dimension_numbers = #tpu.dot_dimension_numbers<[1], [0], [0], [1], [0, 0, 1, 1], [], []>} : vector<2x4xbf16>, vector<4x256xbf16>, vector<2x256xf32> -> vector<2x256xf32>
    %cst_7 = arith.constant dense<0.000000e+00> : vector<2xf32>
    %9 = vector.multi_reduction <add>, %8, %cst_7 [1] : vector<2x256xf32> to vector<2xf32>
    %10 = vector.shape_cast %9 : vector<2xf32> to vector<2x1xf32>
    %11 = arith.addf %4, %10 : vector<2x1xf32>
    %12 = arith.mulf %8, %8 : vector<2x256xf32>
    %cst_8 = arith.constant dense<0.000000e+00> : vector<2xf32>
    %13 = vector.multi_reduction <add>, %12, %cst_8 [1] : vector<2x256xf32> to vector<2xf32>
    %14 = vector.shape_cast %13 : vector<2xf32> to vector<2x1xf32>
    %15 = arith.addf %5, %14 : vector<2x1xf32>
    %c1 = arith.constant 1 : index
    %c0_9 = arith.constant 0 : index
    %c0_10 = arith.constant 0 : index
    %16 = vector.load %arg2[%c1, %c0_9, %c0_10] : memref<2x4x256xbf16, #tpu.memory_space<vmem>>, vector<1x4x256xbf16>
    %17 = vector.shape_cast %16 : vector<1x4x256xbf16> to vector<4x256xbf16>
    %cst_11 = arith.constant dense<0.000000e+00> : vector<2x256xf32>
    %18 = tpu.matmul %3, %17, %cst_11 {dimension_numbers = #tpu.dot_dimension_numbers<[1], [0], [0], [1], [0, 0, 1, 1], [], []>} : vector<2x4xbf16>, vector<4x256xbf16>, vector<2x256xf32> -> vector<2x256xf32>
    %cst_12 = arith.constant dense<0.000000e+00> : vector<2xf32>
    %19 = vector.multi_reduction <add>, %18, %cst_12 [1] : vector<2x256xf32> to vector<2xf32>
    %20 = vector.shape_cast %19 : vector<2xf32> to vector<2x1xf32>
    %21 = arith.addf %11, %20 : vector<2x1xf32>
    %22 = arith.mulf %18, %18 : vector<2x256xf32>
    %cst_13 = arith.constant dense<0.000000e+00> : vector<2xf32>
    %23 = vector.multi_reduction <add>, %22, %cst_13 [1] : vector<2x256xf32> to vector<2xf32>
    %24 = vector.shape_cast %23 : vector<2xf32> to vector<2x1xf32>
    %25 = arith.addf %15, %24 : vector<2x1xf32>
    %c0_14 = arith.constant 0 : index
    %c0_15 = arith.constant 0 : index
    %c0_16 = arith.constant 0 : index
    %26 = vector.load %arg4[%c0_14, %c0_15, %c0_16] : memref<1x2x1xf32, #tpu.memory_space<vmem>>, vector<1x2x1xf32>
    %27 = vector.shape_cast %26 : vector<1x2x1xf32> to vector<2x1xf32>
    %28 = arith.addf %27, %21 : vector<2x1xf32>
    %c0_17 = arith.constant 0 : index
    %c0_18 = arith.constant 0 : index
    %c0_19 = arith.constant 0 : index
    %29 = vector.load %arg4[%c0_17, %c0_18, %c0_19] : memref<1x2x1xf32, #tpu.memory_space<vmem>>, vector<1x2x1xf32>
    %30 = vector.shape_cast %29 : vector<1x2x1xf32> to vector<2x1xf32>
    %31 = vector.shape_cast %28 : vector<2x1xf32> to vector<1x2x1xf32>
    tpu.vector_store %arg4[%c0_17, %c0_18, %c0_19], %31 {strides = array<i32>} : memref<1x2x1xf32, #tpu.memory_space<vmem>>, vector<1x2x1xf32>,
    %c0_20 = arith.constant 0 : index
    %c0_21 = arith.constant 0 : index
    %c0_22 = arith.constant 0 : index
    %32 = vector.load %arg5[%c0_20, %c0_21, %c0_22] : memref<1x2x1xf32, #tpu.memory_space<vmem>>, vector<1x2x1xf32>
    %33 = vector.shape_cast %32 : vector<1x2x1xf32> to vector<2x1xf32>
    %34 = arith.addf %33, %25 : vector<2x1xf32>
    %c0_23 = arith.constant 0 : index
    %c0_24 = arith.constant 0 : index
    %c0_25 = arith.constant 0 : index
    %35 = vector.load %arg5[%c0_23, %c0_24, %c0_25] : memref<1x2x1xf32, #tpu.memory_space<vmem>>, vector<1x2x1xf32>
    %36 = vector.shape_cast %35 : vector<1x2x1xf32> to vector<2x1xf32>
    %37 = vector.shape_cast %34 : vector<2x1xf32> to vector<1x2x1xf32>
    tpu.vector_store %arg5[%c0_23, %c0_24, %c0_25], %37 {strides = array<i32>} : memref<1x2x1xf32, #tpu.memory_space<vmem>>, vector<1x2x1xf32>,
    return
  }
  func.func @transform_0(%arg0: i32, %arg1: i32) -> (i32, i32, i32) {
    %c0_i32 = arith.constant 0 : i32
    %c0_i32_0 = arith.constant 0 : i32
    return %arg0, %c0_i32, %arg1 : i32, i32, i32
  }
  func.func @transform_1(%arg0: i32, %arg1: i32) -> (i32, i32) {
    %c0_i32 = arith.constant 0 : i32
    %c0_i32_0 = arith.constant 0 : i32
    %c0_i32_1 = arith.constant 0 : i32
    return %c0_i32, %c0_i32_0 : i32, i32
  }
  func.func @transform_2(%arg0: i32, %arg1: i32) -> (i32, i32, i32) {
    %c0_i32 = arith.constant 0 : i32
    %c0_i32_0 = arith.constant 0 : i32
    %c0_i32_1 = arith.constant 0 : i32
    return %arg0, %c0_i32, %c0_i32_0 : i32, i32, i32
  }
  func.func @transform_3(%arg0: i32, %arg1: i32) -> (i32, i32, i32) {
    %c0_i32 = arith.constant 0 : i32
    %c0_i32_0 = arith.constant 0 : i32
    %c0_i32_1 = arith.constant 0 : i32
    return %arg0, %c0_i32, %c0_i32_0 : i32, i32, i32
  }
}

</mosaic_0001>

<bundles_post_ra>
// kernel: tpu_custom_call.1
= control target key start
LH: loop header
LB: loop body
LE: loop exit
PB: predicated region body
PF: predicated region fallthrough
CT: control target
= control target key end

     0   :  { %9 = vsyncpa [#allocation3], 0  ;;  %s233_s12 = smov [#allocation2]   ;;  %s298_s0 = inlined_call_operand.hbm [shape: bf16[2,4,256], index: 0, kind: input, shape index: {}]   ;;  %s299_s1 = inlined_call_operand.vmem [shape: bf16[2,4], index: 1, kind: input, shape index: {}]   ;;  %s300_s2 = inlined_call_operand.vmem [shape: f32[1,2,1], index: 2, kind: output, shape index: {0}]   ;;  %s301_s3 = inlined_call_operand.vmem [shape: f32[1,2,1], index: 3, kind: output, shape index: {1}]  }
   0x1   :  { %s15_s13 = sshll.u32 %s233_s12, 4  ;;  %s16_s13 = int_to_ptr.vmem [resolvable:$true] %s15_s13 }
   0x2   :  { %s219_s14 = scalar_lea.vmem %s16_s13, 128  ;;  %p224_p1 = scmp.lt.s32.totalorder %s16_s13, %s16_s13 }
   0x3   :  { %p220_p0 = scmp.ne.s32.totalorder %s16_s13, %s219_s14  ;;  %p225_p2 = scmp.lt.s32.totalorder %s219_s14, %s219_s14 }
   0x5   :  { %p226_p3 = por %p225_p2, %p224_p1 }
   0x7   :  { %p227_p4 = pnand %p226_p3, %p220_p0 }
   0x9   :  { %230 = shalt.err (!%p227_p4)
}
   0xa   :  { %s234_s15 = smov 64   ;;  %s235_s16 = smov 4  }
   0xb   :  { %21 = dma.hbm_to_vmem [thread:$0]  %s298_s0, 128, %s16_s13, [#allocation3], %s234_s15, %s234_s15, %s235_s16  }
   0xc   :  { %231 = dma.done.wait [#allocation3], 128  }
   0xd   :  { %232 = vsyncadd [#allocation3], 4294967168  ;;  %v236_v0 = vmov 0   ;;  %vm50_vm0 = vcmask 1041408   ;;  %v35_v7 = vld [vmem:[%s299_s1] sm:$0x1] }
   0xe   :  { %89 = vmatprep.mubr.bf16.mxu0 %v236_v0  ;;  %161 = vmatprep.mubr.bf16.mxu1 %v236_v0  ;;  %v200_v1 = vld.sshfl [vmem:[#allocation2] sm:$0x33 pattern:$0x76325410]  ;;  %vm46_vm1 = vcmask 31744   ;;  %vm32_vm2 = vcmask 1024  }
   0xf   :  { %v45_v2 = vcombine.high %v200_v1, %v200_v1  ;;  %v203_v3 = vld.sshfl [vmem:[#allocation2 + $0x4] sm:$0x33 pattern:$0x76325410]  ;;  %v52_v4 = vsel %vm50_vm0, %v200_v1, 0  ;;  %v237_v32 = vmov 0.0  }
  0x10   :  { %v122_v5 = vcombine.high %v203_v3, %v203_v3  ;;  %v124_v6 = vsel %vm50_vm0, %v203_v3, 0  ;;  %33 = vst.msk [vmem:[%s300_s2] sm:$0x3] %vm32_vm2, %v237_v32  ;;  %34 = vst.msk [vmem:[%s301_s3] sm:$0x3] %vm32_vm2, %v237_v32 }
  0x11   :  { %201 = vmatprep.subr.msk.bf16.mxu0 %vm50_vm0, %v45_v2 }
  0x12   :  { %204 = vmatprep.subr.msk.bf16.mxu1 %vm50_vm0, %v122_v5  ;;  %72 = vmatpush1.bf16.msra.mxu0 %v52_v4 }
  0x13   :  { %144 = vmatpush1.bf16.msra.mxu1 %v124_v6 }
  0x15   :  { %202 = vmatmul.mubr.msk.bf16.vlgmr.msra.gmra.mxu0 %vm46_vm1, %v35_v7 }
  0x16   :  { %205 = vmatmul.mubr.msk.bf16.vlgmr.msra.gmra.mxu1 %vm46_vm1, %v35_v7 }
  0x17   :  { %v184_v35 = vld [vmem:[%s300_s2] sm:$0x3] }
  0x18   :  { %v188_v40 = vld [vmem:[%s301_s3] sm:$0x3] }
  0xd5   :  { %v91_v8 = vpop.f32.mrf.mxu0 }
  0xd6   :  { %v163_v9 = vpop.f32.mrf.mxu1  ;;  %v104_v10 = vmul.f32 %v91_v8, %v91_v8  ;;  %v98_v15 = vsel %vm50_vm0, %v91_v8, 0.0 }
  0xd7   :  { %v93_v11 = vpop.f32.mrf.mxu0  ;;  %v176_v12 = vmul.f32 %v163_v9, %v163_v9  ;;  %v170_v19 = vsel %vm50_vm0, %v163_v9, 0.0 }
  0xd8   :  { %v105_v13 = vmul.f32 %v93_v11, %v93_v11  ;;  %v165_v14 = vpop.f32.mrf.mxu1  ;;  %v99_v16 = vsel %vm50_vm0, %v93_v11, 0.0  ;;  %v106_v28 = vsel %vm50_vm0, %v104_v10, 0.0 }
  0xd9   :  { %v177_v17 = vmul.f32 %v165_v14, %v165_v14  ;;  %v95_v18 = vpop.f32.mrf.mxu0  ;;  %v171_v20 = vsel %vm50_vm0, %v165_v14, 0.0  ;;  %v100_v21 = vadd.f32 %v99_v16, %v98_v15  ;;  %v178_v29 = vsel %vm50_vm0, %v176_v12, 0.0 }
  0xda   :  { %v167_v22 = vpop.f32.mrf.mxu1  ;;  %v172_v23 = vadd.f32 %v171_v20, %v170_v19  ;;  %v107_v24 = vsel %vm50_vm0, %v105_v13, 0.0 }
  0xdb   :  { %101 = vadd.xlane.f32.xlu0 %v100_v21  ;;  %v96_v25 = vpop.f32.mrf.mxu0  ;;  %v179_v26 = vsel %vm50_vm0, %v177_v17, 0.0  ;;  %v108_v30 = vadd.f32 %v107_v24, %v106_v28 }
  0xdc   :  { %173 = vadd.xlane.f32.xlu1 %v172_v23  ;;  %v168_v27 = vpop.f32.mrf.mxu1  ;;  %v180_v31 = vadd.f32 %v179_v26, %v178_v29 }
  0xdf   :  { %109 = vadd.xlane.f32.xlu0 %v108_v30 }
  0xe0   :  { %181 = vadd.xlane.f32.xlu1 %v180_v31 }
 0x164   :  { %v102_v33 = vpop.xlane.xlu0 %101 }
 0x165   :  { %v174_v34 = vpop.xlane.xlu1 %173 }
 0x166   :  { %v175_v36 = vadd.f32 %v174_v34, %v102_v33 }
 0x168   :  { %v185_v37 = vadd.f32 %v184_v35, %v175_v36  ;;  %v110_v38 = vpop.xlane.xlu0 %109 }
 0x169   :  { %v182_v39 = vpop.xlane.xlu1 %181 }
 0x16a   :  { %187 = vst.msk [vmem:[%s300_s2] sm:$0x3] %vm32_vm2, %v185_v37  ;;  %v183_v41 = vadd.f32 %v182_v39, %v110_v38 }
 0x16c   :  { %v189_v42 = vadd.f32 %v188_v40, %v183_v41 }
 0x16e   :  { %190 = vst.msk [vmem:[%s301_s3] sm:$0x3] %vm32_vm2, %v189_v42 }
 0x16f   :  { %199 = vsyncpa [#allocation3], 1 }

</bundles_post_ra>
